<compile_context>
chip_gen: v7x
topology: tpu7x:2x2x1
jax: 0.10.0
libtpu: 0.0.40
codegen_flags: <defaults>
</compile_context>

<pallas_src>
import functools
import math

import jax
import jax.numpy as jnp
from jax import lax
from jax.experimental import pallas as pl
from jax.experimental.pallas import tpu as pltpu


def _lam_kernel(gamma_ref, x_ref, o_ref, *, n_layers, block_rows, total_rows):
    """One grid step: Bt batch elements as a (R, D) = (Bt*n_layers, D) slab."""
    x = x_ref[...]                                           # (R, D), native dtype
    R = block_rows

    # Partial final block (B % Bt != 0): zero rows past the real array so stale
    # VMEM cannot leak NaN/Inf into valid rows through the matmuls.
    if total_rows % block_rows != 0:
        row = (pl.program_id(0) * block_rows
               + lax.broadcasted_iota(jnp.int32, (R, 1), 0))
        x = jnp.where(row < total_rows, x, jnp.zeros_like(x))

    # Folded gram: energy[i, j] = <row_i, row_j> for all R rows in one
    # full-width 'NT' MXU matmul (one weight push per D-tile instead of one per
    # batch element).  Operands stay in native dtype; accumulation is f32.
    energy = lax.dot_general(
        x, x,
        dimension_numbers=(((1,), (1,)), ((), ())),
        preferred_element_type=jnp.float32)                  # (R, R) f32

    # Block-diagonal mask: row i may only attend to rows of its own batch
    # element (its n_layers-sized group).  Group ids use an exact
    # floor((i + 0.5) / N) in f32 so no vector integer division is needed.
    inv_n = jnp.float32(1.0 / n_layers)
    ri = lax.broadcasted_iota(jnp.int32, (R, R), 0).astype(jnp.float32)
    ci = lax.broadcasted_iota(jnp.int32, (R, R), 1).astype(jnp.float32)
    same = jnp.floor((ri + 0.5) * inv_n) == jnp.floor((ci + 0.5) * inv_n)

    # softmax(rowmax(E) - E) == exp(rowmin(E) - E) / sum(...) by shift
    # invariance; exponents <= 0.  Masked columns get exp(-1e30) == 0 exactly.
    s_min = jnp.min(jnp.where(same, energy, jnp.float32(1e30)),
                    axis=-1, keepdims=True)
    e = jnp.exp(jnp.where(same, s_min - energy, jnp.float32(-1e30)))
    denom = jnp.sum(e, axis=-1, keepdims=True)               # in [1, n_layers]
    attn = (e / denom).astype(x.dtype)                       # exact reciprocal

    # out = attention @ x ; out = gamma * out + x.  Cross-group attn is exactly
    # 0, so the folded matmul equals the per-batch bmm.
    out = lax.dot_general(
        attn, x,
        dimension_numbers=(((1,), (0,)), ((), ())),
        preferred_element_type=jnp.float32)                  # (R, D) f32
    gamma = gamma_ref[0]
    o_ref[...] = (gamma * out + x.astype(jnp.float32)).astype(o_ref.dtype)


def _pick_block_batches(B, N, D, itemsize,
                        target_block_bytes=2 * 1024 * 1024, mxu_width=256):
    """Number of batch elements (Bt) folded into one (Bt*N, D) grid block."""
    bt_unit = 8 // math.gcd(N, 8)            # keeps (Bt*N) % 8 == 0 for partial blocks
    per_batch = N * D * itemsize
    bt = max(1, target_block_bytes // per_batch)     # HBM-amortizing block size
    bt = min(bt, max(1, mxu_width // N))             # keep Bt*N <= MXU tile width
    bt = min(bt, max(1, (B + 1) // 2))               # >= 2 grid steps (v7x megacore)
    bt = max(bt_unit, (bt // bt_unit) * bt_unit)     # sublane-multiple row count
    if bt >= B:
        bt = B     # single block: row dim equals the full array dim (rule-exempt)
    return bt


def lam_module_forward(x, gamma):
    """x: (B, N, C, H, W), gamma: (1,)  ->  (B, N*C, H, W)."""
    B, N, C, H, W = x.shape
    D = C * H * W
    x2 = x.reshape(B * N, D)                 # free row-major view; no pad / slice

    Bt = _pick_block_batches(B, N, D, jnp.dtype(x.dtype).itemsize)
    R = Bt * N
    grid = (pl.cdiv(B, Bt),)                 # Bt need not divide B

    kernel = functools.partial(_lam_kernel, n_layers=N,
                               block_rows=R, total_rows=B * N)

    out2 = pl.pallas_call(
        kernel,
        out_shape=jax.ShapeDtypeStruct((B * N, D), x.dtype),
        grid_spec=pltpu.PrefetchScalarGridSpec(
            num_scalar_prefetch=0,
            grid=grid,
            in_specs=[
                pl.BlockSpec(memory_space=pltpu.SMEM),       # gamma (1,) scalar
                pl.BlockSpec((R, D), lambda b: (b, 0)),      # x row slab
            ],
            out_specs=pl.BlockSpec((R, D), lambda b: (b, 0)),
        ),
        compiler_params=pltpu.CompilerParams(
            dimension_semantics=("parallel",),               # megacore sharding
            vmem_limit_bytes=32 * 1024 * 1024,               # safe on v5e/v6e/v7x
        ),
    )(gamma, x2)

    # (B*N, D) -> (B, N*C, H, W): same contiguous layout as the PyTorch .view.
    return out2.reshape(B, N * C, H, W)


def lam_reference(x, gamma):
    """Pure-JAX reference mirroring the PyTorch forward (high-precision dots)."""
    B, N, C, H, W = x.shape
    q = x.reshape(B, N, -1).astype(jnp.float32)
    energy = jnp.einsum("bnd,bmd->bnm", q, q, precision=lax.Precision.HIGHEST)
    energy_new = jnp.max(energy, axis=-1, keepdims=True) - energy
    attn = jax.nn.softmax(energy_new, axis=-1)
    out = jnp.einsum("bnm,bmd->bnd", attn, q, precision=lax.Precision.HIGHEST)
    out = gamma[0].astype(jnp.float32) * out + q
    return out.reshape(B, N * C, H, W).astype(x.dtype)


def _check(x, gamma, atol=2e-3, rtol=2e-2):
    out = jax.block_until_ready(lam_module_forward(x, gamma))
    ref = lam_reference(x, gamma)
    assert out.shape == ref.shape
    assert jnp.allclose(out, ref, atol=atol, rtol=rtol), (
        f"mismatch vs reference: max abs err {jnp.max(jnp.abs(out - ref))}")
    return out


if __name__ == "__main__":
    key = jax.random.PRNGKey(0)
    k0, k1, k2 = jax.random.split(key, 3)

    # Small shapes consistent with the module: B=2 batch, N=8 layers, C=4
    # channels, H=W=16  =>  D = 1024.  Modest input scale keeps the softmax
    # well-conditioned across backend matmul-precision defaults.
    B, N, C, H, W = 2, 8, 4, 16, 16
    x = 0.125 * jax.random.normal(k0, (B, N, C, H, W), dtype=jnp.float32)

    # gamma initialized exactly as in the module __init__: zeros(1).
    gamma0 = jnp.zeros((1,), dtype=jnp.float32)
    out0 = _check(x, gamma0)
    assert out0.shape == (B, N * C, H, W)

    # Nonzero gamma exercises the attention path (previously failed due to the
    # approximate reciprocal; now an exact divide).
    gamma1 = jnp.array([0.5], dtype=jnp.float32)
    _check(x, gamma1)

    # D = 300 (not a multiple of 128): full-D block, no wrapper pad / slice.
    x_odd_d = 0.125 * jax.random.normal(k1, (B, N, 3, 10, 10), dtype=jnp.float32)
    _check(x_odd_d, gamma1)

    # B = 3 does not divide by the chosen batch tile (Bt = 2): exercises the
    # cdiv grid and the in-kernel zeroing of the partial last block.
    x_odd_b = 0.125 * jax.random.normal(k2, (3, N, C, H, W), dtype=jnp.float32)
    _check(x_odd_b, gamma1)

    print("KERNEL_OK")
</pallas_src>

<mosaic_0001>
module attributes {stable_mosaic.version = 11 : i64} {
  func.func @_lam_kernel(%arg0: i32, %arg1: memref<1xf32, #tpu.memory_space<smem>>, %arg2: memref<8x1024xf32, #tpu.memory_space<vmem>>, %arg3: memref<8x1024xf32, #tpu.memory_space<vmem>>) attributes {dimension_semantics = [#tpu.dimension_semantics<parallel>], iteration_bounds = array<i64: 2>, scalar_prefetch = 0 : i64, scratch_operands = 0 : i64, tpu.core_type = #tpu.core_type<tc>, window_params = [{transform_indices = @transform_0, window_bounds = array<i64: 1>}, {transform_indices = @transform_1, window_bounds = array<i64: 8, 1024>}, {transform_indices = @transform_2, window_bounds = array<i64: 8, 1024>}]} {
    %c0 = arith.constant 0 : index
    %c0_0 = arith.constant 0 : index
    %0 = vector.load %arg2[%c0, %c0_0] : memref<8x1024xf32, #tpu.memory_space<vmem>>, vector<8x1024xf32>
    %cst = arith.constant dense<0.000000e+00> : vector<8x8xf32>
    %1 = tpu.matmul %0, %0, %cst {dimension_numbers = #tpu.dot_dimension_numbers<[1], [1], [0], [0], [0, 0, 1, 0], [], []>} : vector<8x1024xf32>, vector<8x1024xf32>, vector<8x8xf32> -> vector<8x8xf32>
    %2 = tpu.iota {dimensions = array<i32: 0>} : vector<8x8xi32>
    %3 = arith.sitofp %2 : vector<8x8xi32> to vector<8x8xf32>
    %4 = tpu.iota {dimensions = array<i32: 1>} : vector<8x8xi32>
    %5 = arith.sitofp %4 : vector<8x8xi32> to vector<8x8xf32>
    %cst_1 = arith.constant 5.000000e-01 : f32
    %6 = vector.broadcast %cst_1 : f32 to vector<8x8xf32>
    %7 = arith.addf %3, %6 : vector<8x8xf32>
    %cst_2 = arith.constant 1.250000e-01 : f32
    %8 = vector.broadcast %cst_2 : f32 to vector<8x8xf32>
    %9 = arith.mulf %7, %8 : vector<8x8xf32>
    %10 = math.floor %9 : vector<8x8xf32>
    %cst_3 = arith.constant 5.000000e-01 : f32
    %11 = vector.broadcast %cst_3 : f32 to vector<8x8xf32>
    %12 = arith.addf %5, %11 : vector<8x8xf32>
    %cst_4 = arith.constant 1.250000e-01 : f32
    %13 = vector.broadcast %cst_4 : f32 to vector<8x8xf32>
    %14 = arith.mulf %12, %13 : vector<8x8xf32>
    %15 = math.floor %14 : vector<8x8xf32>
    %16 = arith.cmpf oeq, %10, %15 : vector<8x8xf32>
    %cst_5 = arith.constant 1.000000e+30 : f32
    %17 = vector.broadcast %cst_5 : f32 to vector<8x8xf32>
    %18 = arith.select %16, %1, %17 : vector<8x8xi1>, vector<8x8xf32>
    %cst_6 = arith.constant dense<0x7F800000> : vector<8xf32>
    %19 = vector.multi_reduction <minimumf>, %18, %cst_6 [1] : vector<8x8xf32> to vector<8xf32>
    %20 = vector.shape_cast %19 : vector<8xf32> to vector<8x1xf32>
    %21 = vector.broadcast %20 : vector<8x1xf32> to vector<8x8xf32>
    %22 = arith.subf %21, %1 : vector<8x8xf32>
    %cst_7 = arith.constant -1.000000e+30 : f32
    %23 = vector.broadcast %cst_7 : f32 to vector<8x8xf32>
    %24 = arith.select %16, %22, %23 : vector<8x8xi1>, vector<8x8xf32>
    %25 = math.exp %24 : vector<8x8xf32>
    %cst_8 = arith.constant dense<0.000000e+00> : vector<8xf32>
    %26 = vector.multi_reduction <add>, %25, %cst_8 [1] : vector<8x8xf32> to vector<8xf32>
    %27 = vector.shape_cast %26 : vector<8xf32> to vector<8x1xf32>
    %28 = vector.broadcast %27 : vector<8x1xf32> to vector<8x8xf32>
    %29 = arith.divf %25, %28 : vector<8x8xf32>
    %cst_9 = arith.constant dense<0.000000e+00> : vector<8x1024xf32>
    %30 = tpu.matmul %29, %0, %cst_9 {dimension_numbers = #tpu.dot_dimension_numbers<[1], [0], [0], [1], [0, 0, 1, 1], [], []>} : vector<8x8xf32>, vector<8x1024xf32>, vector<8x1024xf32> -> vector<8x1024xf32>
    %c0_10 = arith.constant 0 : index
    %31 = memref.load %arg1[%c0_10] : memref<1xf32, #tpu.memory_space<smem>>
    %32 = vector.broadcast %31 : f32 to vector<8x1024xf32>
    %33 = arith.mulf %32, %30 : vector<8x1024xf32>
    %34 = arith.addf %33, %0 : vector<8x1024xf32>
    %c0_11 = arith.constant 0 : index
    %c0_12 = arith.constant 0 : index
    %35 = vector.load %arg3[%c0_11, %c0_12] : memref<8x1024xf32, #tpu.memory_space<vmem>>, vector<8x1024xf32>
    tpu.vector_store %arg3[%c0_11, %c0_12], %34 {strides = array<i32>} : memref<8x1024xf32, #tpu.memory_space<vmem>>, vector<8x1024xf32>,
    return
  }
  func.func @transform_0(%arg0: i32) -> i32 {
    %c0_i32 = arith.constant 0 : i32
    %c0_i32_0 = arith.constant 0 : i32
    return %c0_i32 : i32
  }
  func.func @transform_1(%arg0: i32) -> (i32, i32) {
    %c0_i32 = arith.constant 0 : i32
    %c0_i32_0 = arith.constant 0 : i32
    return %arg0, %c0_i32 : i32, i32
  }
  func.func @transform_2(%arg0: i32) -> (i32, i32) {
    %c0_i32 = arith.constant 0 : i32
    %c0_i32_0 = arith.constant 0 : i32
    return %arg0, %c0_i32 : i32, i32
  }
}

</mosaic_0001>

<bundles_post_ra>
// kernel: tpu_custom_call.1
= control target key start
LH: loop header
LB: loop body
LE: loop exit
PB: predicated region body
PF: predicated region fallthrough
CT: control target
= control target key end

     0   :  { %s1289_s0 = inlined_call_operand.<no memory space> [shape: f32[1], index: 0, kind: input, shape index: {}]   ;;  %s1290_s1 = inlined_call_operand.hbm [shape: f32[16,1024], index: 1, kind: input, shape index: {}]   ;;  %s1291_s2 = inlined_call_operand.hbm [shape: f32[16,1024], index: 2, kind: output, shape index: {}]  }
   0x1   :  { %7 = sst [smem:[#allocation2]] %s1289_s0 }
   0x2   :  { %8 = vsyncpa [#allocation4], 0 }
   0x3   :  { %10 = vsyncpa [#allocation4 + $0x1], 0 }
   0x4   :  { %11 = vsyncpa [#allocation5], 0 }
   0x5   :  { %13 = vsyncpa [#allocation5 + $0x1], 0  ;;  %s1070_s11 = smov 0   ;;  %s1072_s12 = smov 0  }
   0x6   :  { %s1074_s13 = smov 0   ;;  %s1076_s14 = smov 0  }
   0x7 LB: > { %s1091_s0 = sadd.s32 4294967295, %s1047_s14   ;;  %s874_s15 = sadd.s32 4294967294, %s1047_s14   ;;  %s1047_s14 = sphi %s1076_s14, %s1306_s14   ;;  %s1043_s13 = sphi %s1074_s13, %s1305_s13   ;;  %s1039_s12 = sphi %s1072_s12, %s1304_s12   ;;  %s1035_s11 = sphi %s1070_s11, %s1303_s11  }
   0x8   : > { %s1095_s16 = sadd.s32 1, %s1047_s14   ;;  %s47_s17 = sadd.s32 1, %s1043_s13 }
   0x9   : > { %s44_s18 = ssub.s32 %s1047_s14, %s1095_s16  ;;  %p54_p0 = scmp.ne.s32.totalorder %s1043_s13, %s1039_s12 }
   0xa   : > { %p45_p1 = scmp.eq.s32.totalorder %s44_s18, 0  ;;  %p55_p2 = scmp.eq.s32.totalorder %s1047_s14, 0 }
   0xb   : > { %p60_p3 = scmp.ne.s32.totalorder %s1039_s12, %s1035_s11  ;;  %p61_p4 = scmp.eq.s32.totalorder %s1091_s0, 0 }
   0xc   : > { %s1107_s19 = scalar_select %p45_p1, %s1043_s13, %s47_s17  }
   0xd   : > { %p1109_p5 = por %p55_p2, %p54_p0  ;;  %p1113_p6 = por %p61_p4, %p60_p3 }
   0xe   : > { %p84_p7 = scmp.eq.s32.totalorder %s1091_s0, 1  ;;  %p90_p8 = scmp.eq.s32.totalorder %s874_s15, 1 }
   0xf   : > { %p912_p10 = scmp.lt.s32.totalorder %s1047_s14, 2  ;;  %s113_s24 = sand.u32 1, %s1043_s13  }
  0x10   : > { %p1120_p11 = por %p84_p7, %p54_p0  ;;  %p1124_p12 = por %p90_p8, %p60_p3 }
  0x11   : > { %s892_s25 = sshll.u32 %s1047_s14, 10  ;;  %s877_s26 = sshll.u32 %s113_s24, 6 }
  0x12   : > { %s1295_s22 = scalar_select %p1120_p11, 1, 0 }
  0x13   : > { %s1296_s23 = scalar_select %p1124_p12, 1, 0 }
  0x14   : > { %s1133_s29 = scalar_lea.hbm %s1290_s1, %s892_s25  ;;  %s117_s30 = scalar_lea.vmem [#allocation3], %s877_s26 }
  0x15   : > { %s125_s3 = sshll.u32 %s117_s30, 4  ;;  %p1137_p13 = pnand %p912_p10, %p1109_p5  ;;  %s1141_s3 = int_to_ptr.vmem [resolvable:$true] %s125_s3 }
  0x16   : > { %s114_s5 = scalar_lea.sflag [#allocation4], %s113_s24  ;;  %s951_s6 = scalar_lea.hbm %s1133_s29, 1024 }
  0x17   : > { %p952_p2 = scmp.ne.s32.totalorder %s1133_s29, %s951_s6  ;;  %p953_p3 = pneg %p1137_p13 }
  0x18   : > { %s956_s9 = scalar_lea.hbm %s1290_s1, 2048  ;;  %p957_p5 = scmp.lt.u32.totalorder %s1133_s29, %s1290_s1 }
  0x19   : > { %p954_p4 = pnand %p953_p3, %p952_p2  ;;  %p958_p8 = scmp.lt.u32.totalorder %s956_s9, %s951_s6 }
  0x1a   : > { %p960_p9 = scmp.lt.u32.totalorder %s951_s6, %s1133_s29 }
  0x1b   : > { %p955_p7 = pneg %p954_p4  ;;  %p959_p10 = por %p958_p8, %p957_p5 }
  0x1d   : > { %p961_p0 = por %p960_p9, %p959_p10 }
  0x1f   : > { %p962_p1 = pnand %p961_p0, %p955_p7 }
  0x21   : > { %965 = shalt.err (!%p962_p1)
}
  0x22   : > { %s966_s17 = scalar_lea.vmem %s1141_s3, 1024  ;;  %s1049_s18 = smov [#allocation3]  }
  0x23   : > { %p967_p2 = scmp.ne.s32.totalorder %s1141_s3, %s966_s17  ;;  %s971_s20 = sshll.u32 %s1049_s18, 4  ;;  %s972_s20 = int_to_ptr.vmem [resolvable:$false] %s971_s20 }
  0x24   : > { %s973_s24 = scalar_lea.vmem %s972_s20, 2048  ;;  %p974_p11 = scmp.lt.s32.totalorder %s1141_s3, %s972_s20 }
  0x25   : > { %p969_p4 = pnand %p967_p2, %p953_p3  ;;  %p975_p5 = scmp.lt.s32.totalorder %s973_s24, %s966_s17 }
  0x27   : > { %p970_p12 = pneg %p969_p4  ;;  %p976_p8 = por %p975_p5, %p974_p11 }
  0x29   : > { %p977_p9 = pnand %p976_p8, %p970_p12 }
  0x2b   : > { %980 = shalt.err (!%p977_p9)
}
  0x2c   : > { %907 = dma.hbm_to_vmem [thread:$0]  (!%p1137_p13), %s1133_s29, 1024, %s1141_s3, %s114_s5  }
  0x2d   : > { %p1298_p0 = scmp.lt.s32.totalorder %s1047_s14, 3  ;;  %p1299_p1 = scmp.ge.s32.totalorder %s1047_s14, 1 }
  0x2f   : > { %p131_p3 = pnand %p1299_p1, %p1298_p0 }
  0x30   : > { %s1175_s25 = sand.u32 (!%p131_p3), 1, %s1039_s12  }
  0x31   : > { %134 = sbr.rel (%p131_p3) target bundleno = 857 (0x359), region = 28  ;;  %s881_s26 = sshll.u32 (!%p131_p3), %s1175_s25, 6 }
  0x32   : > { %s137_s27 = scalar_lea.sflag (!%p131_p3), [#allocation4], %s1175_s25  ;;  %s140_s28 = scalar_lea.vmem (!%p131_p3), [#allocation3], %s881_s26 }
  0x38   : > { %1026 = dma.done.wait (%p1113_p6), %s137_s27, 1024  }
  0x39   : > { %1028 = vsyncadd (%p1113_p6), %s137_s27, 4294966272  ;;  %v1185_v0 = vld [vmem:[%s140_s28 + $0x8] sm:$0xff]  ;;  %v1187_v1 = vld [vmem:[%s140_s28] sm:$0xff]  ;;  %v449_v8 = vlaneseq  ;;  %vm463_vm1 = vcmask 64512   ;;  %v1050_v29 = vmov 0.0   ;;  %s763_s21 = sld [smem:[#allocation2]] }
  0x3a   : > { %v1189_v2 = vld [vmem:[%s140_s28 + $0x18] sm:$0xff]  ;;  %169 = vmatprep.subr.mxu0 %v1185_v0  ;;  %233 = vmatprep.mubr.f32.mxu0 %v1185_v0  ;;  %v1196_v3 = vld [vmem:[%s140_s28 + $0x10] sm:$0xff]  ;;  %v1199_v4 = vld [vmem:[%s140_s28 + $0x28] sm:$0xff]  ;;  %s160_s29 = scalar_lea.vmem [#allocation6], %s881_s26  ;;  %s893_s30 = sshll.u32 %s1091_s0, 10 }
  0x3b   : > { %170 = vmatpush1.xpose.msra.mxu0 %v1187_v1  ;;  %479 = vmatprep.subr.mxu1 %v1185_v0  ;;  %v1206_v5 = vld [vmem:[%s140_s28 + $0x20] sm:$0xff]  ;;  %v1208_v6 = vld [vmem:[%s140_s28 + $0x38] sm:$0xff]  ;;  %v1214_v7 = vld [vmem:[%s140_s28 + $0x30] sm:$0xff]  ;;  %v450_v9 = vshrl.u32 %v449_v8, 7  ;;  %v453_v10 = vand.u32 127, %v449_v8  ;;  %s804_s3 = sshll.u32 %s160_s29, 4  ;;  %s1245_s6 = scalar_lea.hbm %s1291_s2, %s893_s30  ;;  %s1247_s3 = int_to_ptr.vmem [resolvable:$true] %s804_s3 }
  0x3c   : > { %239 = vmatprep.subr.mxu0 %v1189_v2  ;;  %480 = vmatpush1.msra.mxu1 %v1187_v1  ;;  %s790_s0 = scalar_lea.sflag [#allocation5], %s1175_s25  ;;  %s981_s7 = scalar_lea.vmem %s1247_s3, 1024 }
  0x3d   : > { %550 = vmatprep.subr.mxu1 %v1189_v2  ;;  %v451_v11 = vcvt.s32.f32 %v450_v9  ;;  %v454_v12 = vcvt.s32.f32 %v453_v10  ;;  %543 = vmatprep.mubr.f32.mxu1 %v1050_v29  ;;  %p982_p6 = scmp.ne.s32.totalorder %s1247_s3, %s981_s7  ;;  %p1300_p11 = scmp.ne.s32.totalorder %s1295_s22, 0 }
  0x3e   : > { %234 = vmatmul.mubr.f32.vlgmr.msra.gmra.mrb[0].mxu0 %v1187_v1  ;;  %s1051_s8 = smov [#allocation6]  }
  0x3f   : > { %240 = vmatpush1.xpose.msra.mxu0 %v1196_v3  ;;  %303 = vmatprep.mubr.f32.mxu0 %v1189_v2  ;;  %v455_v13 = vadd.f32 0.5, %v451_v11  ;;  %v458_v14 = vadd.f32 0.5, %v454_v12  ;;  %v764_v33 = vstv %s763_s21  ;;  %p983_p12 = pnand %p982_p6, %p1300_p11  ;;  %s985_s9 = sshll.u32 %s1051_s8, 4  ;;  %s986_s9 = int_to_ptr.vmem [resolvable:$false] %s985_s9 }
  0x40   : > { %309 = vmatprep.subr.mxu0 %v1199_v4  ;;  %s987_s10 = scalar_lea.vmem %s986_s9, 2048  ;;  %p988_p7 = scmp.lt.s32.totalorder %s1247_s3, %s986_s9 }
  0x41   : > { %v456_v15 = vmul.f32 0.125, %v455_v13  ;;  %v459_v16 = vmul.f32 0.125, %v458_v14  ;;  %p984_p13 = pneg %p983_p12  ;;  %p989_p10 = scmp.lt.s32.totalorder %s987_s10, %s981_s7 }
  0x43   : > { %v457_v17 = vfloor.f32 %v456_v15  ;;  %v460_v18 = vfloor.f32 %v459_v16  ;;  %p990_p2 = por %p989_p10, %p988_p7 }
  0x45   : > { %vm461_vm0 = vcmp.eq.f32.partialorder %v457_v17, %v460_v18  ;;  %p991_p4 = pnand %p990_p2, %p984_p13 }
  0x46   : > { %304 = vmatmul.mubr.f32.vlgmr.msra.gmra.mrb[0].mxu0 %v1196_v3 }
  0x47   : > { %310 = vmatpush1.xpose.msra.mxu0 %v1206_v5  ;;  %373 = vmatprep.mubr.f32.mxu0 %v1199_v4 }
  0x48   : > { %379 = vmatprep.subr.mxu0 %v1208_v6 }
  0x4e   : > { %374 = vmatmul.mubr.f32.vlgmr.msra.gmra.mrb[0].mxu0 %v1206_v5 }
  0x4f   : > { %380 = vmatpush1.xpose.msra.mxu0 %v1214_v7  ;;  %443 = vmatprep.mubr.f32.mxu0 %v1208_v6 }
  0x56   : > { %444 = vmatmul.mubr.f32.vlgmr.msra.gmra.mrb[0].mxu0 %v1214_v7 }
 0x129   : > { %v445_v19 = vpop.f32.mrb[0].mxu0 }
 0x12a   : > { %v447_v20 = vpop.f32.mrb[1].mxu0  ;;  %v462_v21 = vsel %vm461_vm0, %v445_v19, 1e+30 }
 0x12b   : > { %v464_v22 = vsel %vm463_vm1, %v462_v21, inf }
 0x12c   : > { %465 = vmin.xlane.f32.xlu0 %v464_v22 }
 0x1b9   : > { %v466_v23 = vpop.xlane.xlu0 %465 }
 0x1ba   : > { %v467_v24 = vsub.f32 %v466_v23, %v445_v19 }
 0x1bc   : > { %v468_v25 = vsel %vm461_vm0, %v467_v24, -1e+30 }
 0x1bd   : > { %v469_v26 = vmul.f32 1.442695, %v468_v25 }
 0x1bf   : > { %947 = vpow2.f32 %v469_v26 }
 0x1c9   : > { %v948_v27 = vpop.eup %947 }
 0x1ca   : > { %v471_v28 = vsel %vm463_vm1, %v948_v27, 0.0 }
 0x1cb   : > { %472 = vadd.xlane.f32.xlu0 %v471_v28 }
 0x258   : > { %v473_v30 = vpop.xlane.xlu0 %472 }
 0x259   : > { %949 = vrcp.f32 %v473_v30 }
 0x263   : > { %v950_v31 = vpop.eup %949 }
 0x264   : > { %v475_v32 = vmul.f32 %v950_v31, %v948_v27 }
 0x266   : > { %883 = vmatmul.mubr.msk.f32.vlgmr.msra.gmra.mrb[0].mxu1 %vm463_vm1, %v475_v32 }
 0x267   : > { %551 = vmatpush1.msra.mxu1 %v1196_v3  ;;  %614 = vmatprep.mubr.f32.mxu1 %v1050_v29 }
 0x268   : > { %621 = vmatprep.subr.mxu1 %v1199_v4 }
 0x26a   : > { %884 = vmatmul.mubr.msk.f32.vlgmr.msra.gmra.mrb[2].mxu1 %vm463_vm1, %v475_v32 }
 0x26b   : > { %622 = vmatpush1.msra.mxu1 %v1206_v5  ;;  %685 = vmatprep.mubr.f32.mxu1 %v1050_v29 }
 0x26c   : > { %692 = vmatprep.subr.mxu1 %v1208_v6 }
 0x26e   : > { %885 = vmatmul.mubr.msk.f32.vlgmr.msra.gmra.mrb[4].mxu1 %vm463_vm1, %v475_v32 }
 0x26f   : > { %693 = vmatpush1.msra.mxu1 %v1214_v7  ;;  %756 = vmatprep.mubr.f32.mxu1 %v1050_v29 }
 0x272   : > { %886 = vmatmul.mubr.msk.f32.vlgmr.msra.gmra.mrb[6].mxu1 %vm463_vm1, %v475_v32 }
 0x339   : > { %v545_v34 = vpop.f32.mrb[0].mxu1 }
 0x33a   : > { %v765_v35 = vmul.f32 %v764_v33, %v545_v34  ;;  %v547_v36 = vpop.f32.mrb[1].mxu1 }
 0x33b   : > { %v766_v37 = vmul.f32 %v764_v33, %v547_v36 }
 0x33c   : > { %v773_v38 = vadd.f32 %v765_v35, %v1187_v1 }
 0x33d   : > { %v774_v39 = vadd.f32 %v766_v37, %v1185_v0  ;;  %v616_v40 = vpop.f32.mrb[2].mxu1 }
 0x33e   : > { %781 = vst [vmem:[%s160_s29] sm:$0xff] %v773_v38  ;;  %v767_v41 = vmul.f32 %v764_v33, %v616_v40  ;;  %v618_v42 = vpop.f32.mrb[3].mxu1 }
 0x33f   : > { %782 = vst [vmem:[%s160_s29 + $0x8] sm:$0xff] %v774_v39  ;;  %v768_v43 = vmul.f32 %v764_v33, %v618_v42 }
 0x340   : > { %v775_v44 = vadd.f32 %v767_v41, %v1196_v3 }
 0x341   : > { %v776_v45 = vadd.f32 %v768_v43, %v1189_v2  ;;  %v687_v46 = vpop.f32.mrb[4].mxu1 }
 0x342   : > { %783 = vst [vmem:[%s160_s29 + $0x10] sm:$0xff] %v775_v44  ;;  %v769_v47 = vmul.f32 %v764_v33, %v687_v46  ;;  %v689_v48 = vpop.f32.mrb[5].mxu1 }
 0x343   : > { %784 = vst [vmem:[%s160_s29 + $0x18] sm:$0xff] %v776_v45  ;;  %v770_v49 = vmul.f32 %v764_v33, %v689_v48 }
 0x344   : > { %v777_v50 = vadd.f32 %v769_v47, %v1206_v5 }
 0x345   : > { %v778_v51 = vadd.f32 %v770_v49, %v1199_v4  ;;  %v758_v52 = vpop.f32.mrb[6].mxu1 }
 0x346   : > { %785 = vst [vmem:[%s160_s29 + $0x20] sm:$0xff] %v777_v50  ;;  %v771_v53 = vmul.f32 %v764_v33, %v758_v52  ;;  %v760_v54 = vpop.f32.mrb[7].mxu1 }
 0x347   : > { %786 = vst [vmem:[%s160_s29 + $0x28] sm:$0xff] %v778_v51  ;;  %v772_v55 = vmul.f32 %v764_v33, %v760_v54 }
 0x348   : > { %v779_v56 = vadd.f32 %v771_v53, %v1214_v7 }
 0x349   : > { %v780_v57 = vadd.f32 %v772_v55, %v1208_v6 }
 0x34a   : > { %787 = vst [vmem:[%s160_s29 + $0x30] sm:$0xff] %v779_v56 }
 0x34b   : > { %788 = vst [vmem:[%s160_s29 + $0x38] sm:$0xff] %v780_v57 }
 0x34c   : > { %994 = shalt.err (!%p991_p4)
}
 0x34d   : > { %s995_s15 = scalar_lea.hbm %s1245_s6, 1024  ;;  %s999_s20 = scalar_lea.hbm %s1291_s2, 2048 }
 0x34e   : > { %p996_p5 = scmp.ne.s32.totalorder %s1245_s6, %s995_s15  ;;  %p1000_p0 = scmp.lt.u32.totalorder %s1245_s6, %s1291_s2 }
 0x34f   : > { %p1001_p1 = scmp.lt.u32.totalorder %s999_s20, %s995_s15  ;;  %p1003_p6 = scmp.lt.u32.totalorder %s995_s15, %s1245_s6 }
 0x350   : > { %p997_p8 = pnand %p996_p5, %p1300_p11 }
 0x351   : > { %p1002_p3 = por %p1001_p1, %p1000_p0 }
 0x352   : > { %p998_p9 = pneg %p997_p8 }
 0x353   : > { %p1004_p12 = por %p1003_p6, %p1002_p3 }
 0x355   : > { %p1005_p13 = pnand %p1004_p12, %p998_p9 }
 0x357   : > { %1008 = shalt.err (!%p1005_p13)
}
 0x358   : > { %902 = dma.vmem_to_hbm [thread:$0]  (%p1300_p11), %s1247_s3, 1024, %s1245_s6, %s790_s0  }
 0x359 PF: > { %s816_s26 = sand.u32 1, %s1035_s11   ;;  %p1301_p7 = scmp.ne.s32.totalorder %s1296_s23, 0 }
 0x35a   : > { %p1302_p10 = scmp.ge.s32.totalorder %s1047_s14, 2  ;;  %s817_s27 = scalar_lea.sflag [#allocation5], %s816_s26 }
 0x35c   : > { %p909_p2 = pnand %p1302_p10, %p1301_p7 }
 0x35e   : > { %1030 = dma.done.wait (!%p909_p2), %s817_s27, 1024  }
 0x35f   : > { %1032 = vsyncadd (!%p909_p2), %s817_s27, 4294966272  ;;  %p16_p4 = scmp.ge.s32.totalorder %s1095_s16, 4   ;;  %s1303_s11 = smov %s1039_s12 }
 0x360   : > { %s1304_s12 = smov %s1043_s13  ;;  %s1305_s13 = smov %s1107_s19 }
 0x361   : > { %s1306_s14 = smov %s1095_s16  ;;  %18 = sbr.rel (!%p16_p4) target bundleno = 7 (0x7), region = 73 }
 0x368   :  { %822 = vsyncpa [#allocation4], 1 }
 0x369   :  { %824 = vsyncpa [#allocation4 + $0x1], 1 }
 0x36a   :  { %825 = vsyncpa [#allocation5], 1 }
 0x36b   :  { %827 = vsyncpa [#allocation5 + $0x1], 1 }

</bundles_post_ra>
